<compile_context>
chip_gen: v5e
topology: v5e:2x2
jax: 0.10.0
libtpu: 0.0.40
codegen_flags: <defaults>
</compile_context>

<pallas_src>
import functools
import math

import jax
import jax.numpy as jnp
from jax import lax
from jax.experimental import pallas as pl
from jax.experimental.pallas import tpu as pltpu


_SUPPORTED_NONLINEARITIES = (None, "relu", "tanh", "sigmoid")
# TODO(synk): other torch.nn.functional nonlinearities (gelu, elu, ...) not mapped here.


def _round_up(x, m):
    return ((x + m - 1) // m) * m


def _fc_kernel(x_ref, w_ref, *args, nonlinearity, has_bias):
    # x_ref: (tile_m, tile_k)   w_ref: (tile_n, tile_k)  [PyTorch layout, trans_b matmul]
    # b_ref: (1, tile_n)        o_ref: (tile_m, tile_n)  acc_ref: f32 (tile_m, tile_n)
    if has_bias:
        b_ref, o_ref, acc_ref = args
    else:
        b_ref = None
        o_ref, acc_ref = args

    k = pl.program_id(2)

    @pl.when(k == 0)
    def _():
        acc_ref[...] = jnp.zeros_like(acc_ref)

    # Contract last dims of both operands -> (tile_m, tile_n) on the MXU,
    # f32 accumulation.
    acc_ref[...] += lax.dot_general(
        x_ref[...],
        w_ref[...],
        dimension_numbers=(((1,), (1,)), ((), ())),
        preferred_element_type=jnp.float32,
    )

    @pl.when(k == pl.num_programs(2) - 1)
    def _():
        acc = acc_ref[...]
        if has_bias:
            acc = acc + b_ref[...].astype(jnp.float32)
        # Epilogue kept in f32 (no bf16 VPU/EUP on v5e; EUP handles tanh/sigmoid).
        if nonlinearity == "relu":
            acc = jnp.maximum(acc, 0.0)
        elif nonlinearity == "tanh":
            acc = jnp.tanh(acc)
        elif nonlinearity == "sigmoid":
            acc = jax.nn.sigmoid(acc)
        o_ref[...] = acc.astype(o_ref.dtype)


def fc_layer(x, weight, bias=None, *, nonlinearity=None,
             tile_m=None, tile_n=None, tile_k=None, compute_dtype=None):
    """Pallas FCLayer forward.

    x:      (batch, input_size)
    weight: (hidden_size, input_size)   -- PyTorch nn.Linear convention (not transposed)
    bias:   (hidden_size,) or None
    nonlinearity: None | "relu" | "tanh" | "sigmoid"
    compute_dtype: optional dtype (e.g. jnp.bfloat16) for the MXU operands;
                   accumulation is always f32.
    """
    if nonlinearity not in _SUPPORTED_NONLINEARITIES:
        raise ValueError(f"unsupported nonlinearity: {nonlinearity}")

    batch, input_size = x.shape
    hidden_size, in2 = weight.shape
    assert in2 == input_size, (in2, input_size)

    out_dtype = x.dtype
    if compute_dtype is not None:
        x = x.astype(compute_dtype)
        weight = weight.astype(compute_dtype)

    # --- tile selection: MXU/lane-aligned, clamped to the (padded) problem. ---
    if tile_m is None:
        tile_m = min(256, _round_up(batch, 8))
    if tile_n is None:
        tile_n = min(256, _round_up(hidden_size, 128))
    if tile_k is None:
        tile_k = min(512, _round_up(input_size, 128))
    assert tile_m % 8 == 0, "tile_m must be a multiple of 8"
    assert tile_n % 128 == 0, "tile_n must be a multiple of 128"
    assert tile_k % 128 == 0, "tile_k must be a multiple of 128"

    m_pad = _round_up(batch, tile_m)
    n_pad = _round_up(hidden_size, tile_n)
    k_pad = _round_up(input_size, tile_k)

    def _pad2(a, rows, cols):
        pr, pc = rows - a.shape[0], cols - a.shape[1]
        if pr == 0 and pc == 0:
            return a
        return jnp.pad(a, ((0, pr), (0, pc)))

    x_p = _pad2(x, m_pad, k_pad)
    w_p = _pad2(weight, n_pad, k_pad)

    has_bias = bias is not None
    inputs = [x_p, w_p]
    if has_bias:
        b_p = bias.astype(jnp.float32).reshape(1, hidden_size)
        b_p = _pad2(b_p, 1, n_pad)
        inputs.append(b_p)

    grid = (m_pad // tile_m, n_pad // tile_n, k_pad // tile_k)

    in_specs = [
        pl.BlockSpec((tile_m, tile_k), lambda i, j, k: (i, k)),   # x tile
        pl.BlockSpec((tile_n, tile_k), lambda i, j, k: (j, k)),   # W tile (PyTorch layout)
    ]
    if has_bias:
        in_specs.append(pl.BlockSpec((1, tile_n), lambda i, j, k: (0, j)))

    kernel = functools.partial(_fc_kernel, nonlinearity=nonlinearity, has_bias=has_bias)

    itemsize = jnp.dtype(x_p.dtype).itemsize
    bytes_accessed = int(
        x_p.size * itemsize + w_p.size * itemsize
        + m_pad * n_pad * jnp.dtype(out_dtype).itemsize
        + (n_pad * 4 if has_bias else 0)
    )
    cost = pl.CostEstimate(
        flops=int(2 * m_pad * n_pad * k_pad),
        transcendentals=int(m_pad * n_pad) if nonlinearity in ("tanh", "sigmoid") else 0,
        bytes_accessed=bytes_accessed,
    )

    out_p = pl.pallas_call(
        kernel,
        out_shape=jax.ShapeDtypeStruct((m_pad, n_pad), out_dtype),
        grid_spec=pltpu.PrefetchScalarGridSpec(
            num_scalar_prefetch=0,
            grid=grid,
            in_specs=in_specs,
            out_specs=pl.BlockSpec((tile_m, tile_n), lambda i, j, k: (i, j)),
            scratch_shapes=[pltpu.VMEM((tile_m, tile_n), jnp.float32)],
        ),
        compiler_params=pltpu.CompilerParams(
            dimension_semantics=("parallel", "parallel", "arbitrary"),
        ),
        cost_estimate=cost,
    )(*inputs)

    if m_pad == batch and n_pad == hidden_size:
        return out_p
    return out_p[:batch, :hidden_size]


def init_fc_params(key, input_size, hidden_size, bias=True):
    """Matches FCLayer.init_hidden: weight ~ U(-r, r), r = 1/sqrt(in*hid); bias = 0."""
    initrange = 1.0 / math.sqrt(input_size * hidden_size)
    weight = jax.random.uniform(
        key, (hidden_size, input_size), jnp.float32,
        minval=-initrange, maxval=initrange)
    b = jnp.zeros((hidden_size,), jnp.float32) if bias else None
    return weight, b


if __name__ == "__main__":
    key = jax.random.PRNGKey(0)
    kx, kw, kx2, kw2 = jax.random.split(key, 4)

    # --- small shape matching the module's default usage -------------------
    batch, input_size, hidden_size = 8, 32, 64
    x = jax.random.normal(kx, (batch, input_size), jnp.float32)
    weight, bias = init_fc_params(kw, input_size, hidden_size, bias=True)

    out = fc_layer(x, weight, bias, nonlinearity=None)
    out = jax.block_until_ready(out)
    out_relu = fc_layer(x, weight, bias, nonlinearity="relu")
    out_relu = jax.block_until_ready(out_relu)
    out_nobias = fc_layer(x, weight, None, nonlinearity="tanh")
    out_nobias = jax.block_until_ready(out_nobias)

    ref = x @ weight.T + bias
    assert out.shape == (batch, hidden_size)
    assert jnp.allclose(out, ref, atol=1e-5), "mismatch vs reference"
    assert jnp.allclose(out_relu, jnp.maximum(ref, 0.0), atol=1e-5), "relu mismatch"
    assert jnp.allclose(out_nobias, jnp.tanh(x @ weight.T), atol=1e-5), "no-bias/tanh mismatch"

    # --- ragged shapes + explicit small tiles: exercises multi-step grid on
    # --- all three axes (M, N and the K reduction with the f32 accumulator).
    b2, in2, hid2 = 96, 160, 192
    x2 = jax.random.normal(kx2, (b2, in2), jnp.float32)
    w2, bias2 = init_fc_params(kw2, in2, hid2, bias=True)
    out2 = fc_layer(x2, w2, bias2, nonlinearity="sigmoid",
                    tile_m=32, tile_n=128, tile_k=128)
    out2 = jax.block_until_ready(out2)
    ref2 = jax.nn.sigmoid(x2 @ w2.T + bias2)
    assert out2.shape == (b2, hid2)
    assert jnp.allclose(out2, ref2, atol=1e-5), "tiled-grid mismatch"

    print("KERNEL_OK")
</pallas_src>

<mosaic_0001>
module attributes {stable_mosaic.version = 11 : i64} {
  func.func @_fc_kernel(%arg0: i32, %arg1: i32, %arg2: i32, %arg3: memref<8x128xf32, #tpu.memory_space<vmem>>, %arg4: memref<128x128xf32, #tpu.memory_space<vmem>>, %arg5: memref<1x128xf32, #tpu.memory_space<vmem>>, %arg6: memref<8x128xf32, #tpu.memory_space<vmem>>, %arg7: memref<8x128xf32, #tpu.memory_space<vmem>>) attributes {dimension_semantics = [#tpu.dimension_semantics<parallel>, #tpu.dimension_semantics<parallel>, #tpu.dimension_semantics<arbitrary>], iteration_bounds = array<i64: 1, 1, 1>, scalar_prefetch = 0 : i64, scratch_operands = 1 : i64, tpu.core_type = #tpu.core_type<tc>, window_params = [{transform_indices = @transform_0, window_bounds = array<i64: 8, 128>}, {transform_indices = @transform_1, window_bounds = array<i64: 128, 128>}, {transform_indices = @transform_2, window_bounds = array<i64: 1, 128>}, {transform_indices = @transform_3, window_bounds = array<i64: 8, 128>}]} {
    %c0_i32 = arith.constant 0 : i32
    %0 = arith.cmpi eq, %arg2, %c0_i32 : i32
    %1 = arith.extui %0 : i1 to i32
    %c0_i32_0 = arith.constant 0 : i32
    %2 = arith.cmpi ne, %1, %c0_i32_0 : i32
    scf.if %2 {
      %cst_10 = arith.constant 0.000000e+00 : f32
      %12 = vector.broadcast %cst_10 : f32 to vector<8x128xf32>
      %c0_11 = arith.constant 0 : index
      %c0_12 = arith.constant 0 : index
      %13 = vector.load %arg7[%c0_11, %c0_12] : memref<8x128xf32, #tpu.memory_space<vmem>>, vector<8x128xf32>
      tpu.vector_store %arg7[%c0_11, %c0_12], %12 {strides = array<i32>} : memref<8x128xf32, #tpu.memory_space<vmem>>, vector<8x128xf32>,
    } else {
    }
    %c0 = arith.constant 0 : index
    %c0_1 = arith.constant 0 : index
    %3 = vector.load %arg7[%c0, %c0_1] : memref<8x128xf32, #tpu.memory_space<vmem>>, vector<8x128xf32>
    %c0_2 = arith.constant 0 : index
    %c0_3 = arith.constant 0 : index
    %4 = vector.load %arg3[%c0_2, %c0_3] : memref<8x128xf32, #tpu.memory_space<vmem>>, vector<8x128xf32>
    %c0_4 = arith.constant 0 : index
    %c0_5 = arith.constant 0 : index
    %5 = vector.load %arg4[%c0_4, %c0_5] : memref<128x128xf32, #tpu.memory_space<vmem>>, vector<128x128xf32>
    %cst = arith.constant dense<0.000000e+00> : vector<8x128xf32>
    %6 = tpu.matmul %4, %5, %cst {dimension_numbers = #tpu.dot_dimension_numbers<[1], [1], [0], [0], [0, 0, 1, 0], [], []>} : vector<8x128xf32>, vector<128x128xf32>, vector<8x128xf32> -> vector<8x128xf32>
    %7 = arith.addf %3, %6 : vector<8x128xf32>
    %c0_6 = arith.constant 0 : index
    %c0_7 = arith.constant 0 : index
    %8 = vector.load %arg7[%c0_6, %c0_7] : memref<8x128xf32, #tpu.memory_space<vmem>>, vector<8x128xf32>
    tpu.vector_store %arg7[%c0_6, %c0_7], %7 {strides = array<i32>} : memref<8x128xf32, #tpu.memory_space<vmem>>, vector<8x128xf32>,
    %c0_i32_8 = arith.constant 0 : i32
    %9 = arith.cmpi eq, %arg2, %c0_i32_8 : i32
    %10 = arith.extui %9 : i1 to i32
    %c0_i32_9 = arith.constant 0 : i32
    %11 = arith.cmpi ne, %10, %c0_i32_9 : i32
    scf.if %11 {
      %c0_10 = arith.constant 0 : index
      %c0_11 = arith.constant 0 : index
      %12 = vector.load %arg7[%c0_10, %c0_11] : memref<8x128xf32, #tpu.memory_space<vmem>>, vector<8x128xf32>
      %c0_12 = arith.constant 0 : index
      %c0_13 = arith.constant 0 : index
      %13 = vector.load %arg5[%c0_12, %c0_13] : memref<1x128xf32, #tpu.memory_space<vmem>>, vector<1x128xf32>
      %14 = vector.broadcast %13 : vector<1x128xf32> to vector<8x128xf32>
      %15 = arith.addf %12, %14 : vector<8x128xf32>
      %c0_14 = arith.constant 0 : index
      %c0_15 = arith.constant 0 : index
      %16 = vector.load %arg6[%c0_14, %c0_15] : memref<8x128xf32, #tpu.memory_space<vmem>>, vector<8x128xf32>
      tpu.vector_store %arg6[%c0_14, %c0_15], %15 {strides = array<i32>} : memref<8x128xf32, #tpu.memory_space<vmem>>, vector<8x128xf32>,
    } else {
    }
    return
  }
  func.func @transform_0(%arg0: i32, %arg1: i32, %arg2: i32) -> (i32, i32) {
    %c0_i32 = arith.constant 0 : i32
    return %arg0, %arg2 : i32, i32
  }
  func.func @transform_1(%arg0: i32, %arg1: i32, %arg2: i32) -> (i32, i32) {
    %c0_i32 = arith.constant 0 : i32
    return %arg1, %arg2 : i32, i32
  }
  func.func @transform_2(%arg0: i32, %arg1: i32, %arg2: i32) -> (i32, i32) {
    %c0_i32 = arith.constant 0 : i32
    %c0_i32_0 = arith.constant 0 : i32
    return %c0_i32, %arg1 : i32, i32
  }
  func.func @transform_3(%arg0: i32, %arg1: i32, %arg2: i32) -> (i32, i32) {
    %c0_i32 = arith.constant 0 : i32
    return %arg0, %arg1 : i32, i32
  }
}

</mosaic_0001>

<bundles_post_ra>
// kernel: tpu_custom_call.1
= control target key start
LH: loop header
LB: loop body
LE: loop exit
PB: predicated region body
PF: predicated region fallthrough
CT: control target
= control target key end

     0   :  { %8 = vsyncpa [#allocation4], 0  ;;  %s239_s0 = inlined_call_operand.hbm [shape: f32[8,128], index: 0, kind: input, shape index: {}]   ;;  %s240_s1 = inlined_call_operand.hbm [shape: f32[128,128], index: 1, kind: input, shape index: {}]   ;;  %s241_s2 = inlined_call_operand.vmem [shape: f32[1,128], index: 2, kind: input, shape index: {}]   ;;  %s242_s3 = inlined_call_operand.hbm [shape: f32[8,128], index: 3, kind: output, shape index: {}]  }
   0x1   :  { %9 = vsyncpa [#allocation7], 0 }
   0x2   :  { %10 = vsyncpa [#allocation5], 0  ;;  %s16_s14 = sshll.u32 %s239_s0, 4  ;;  %s202_s15 = smov [#allocation3]   ;;  %s17_s14 = int_to_ptr.hbm [resolvable:$true] %s16_s14 }
   0x3   :  { %s18_s16 = sshll.u32 %s202_s15, 4  ;;  %s26_s19 = sshll.u32 %s240_s1, 4  ;;  %s19_s16 = int_to_ptr.vmem [resolvable:$true] %s18_s16  ;;  %s27_s19 = int_to_ptr.hbm [resolvable:$true] %s26_s19 }
   0x4   :  { %21 = dma.hbm_to_vmem [thread:$0]  %s17_s14, 128, %s19_s16, [#allocation4]  }
   0x5   :  { %s203_s20 = smov [#allocation6]   ;;  %s204_s22 = smov 128  }
   0x6   :  { %s28_s21 = sshll.u32 %s203_s20, 4  ;;  %s205_s23 = smov 8   ;;  %s29_s21 = int_to_ptr.vmem [resolvable:$true] %s28_s21 }
   0x7   :  { %34 = dma.hbm_to_vmem [thread:$0]  %s27_s19, 2048, %s29_s21, [#allocation7], %s204_s22, %s204_s22, %s205_s23  }
   0x8   :  { %196 = dma.done.wait [#allocation4], 128  }
   0x9   :  { %197 = vsyncadd [#allocation4], 4294967168 }
   0xa   :  { %198 = dma.done.wait [#allocation7], 2048  }
   0xb   :  { %199 = vsyncadd [#allocation7], 4294965248  ;;  %v67_v0 = vld [vmem:[#allocation6 + $0x78] sm:$0xff]  ;;  %v66_v1 = vld [vmem:[#allocation6 + $0x70] sm:$0xff]  ;;  %s206_s24 = smov [#allocation8]   ;;  %s107_s28 = sshll.u32 %s242_s3, 4  ;;  %s108_s28 = int_to_ptr.hbm [resolvable:$true] %s107_s28 }
   0xc   :  { %68 = vmatpush.xpose.msra.mxu0 %v67_v0  ;;  %v65_v2 = vld [vmem:[#allocation6 + $0x68] sm:$0xff]  ;;  %v64_v3 = vld [vmem:[#allocation6 + $0x60] sm:$0xff]  ;;  %v63_v4 = vld [vmem:[#allocation6 + $0x58] sm:$0xff]  ;;  %s105_s25 = sshll.u32 %s206_s24, 4  ;;  %s106_s25 = int_to_ptr.vmem [resolvable:$true] %s105_s25 }
   0xd   :  { %v62_v5 = vld [vmem:[#allocation6 + $0x50] sm:$0xff]  ;;  %v61_v6 = vld [vmem:[#allocation6 + $0x48] sm:$0xff]  ;;  %v60_v7 = vld [vmem:[#allocation6 + $0x40] sm:$0xff] }
   0xe   :  { %v59_v8 = vld [vmem:[#allocation6 + $0x38] sm:$0xff]  ;;  %v58_v9 = vld [vmem:[#allocation6 + $0x30] sm:$0xff]  ;;  %v57_v10 = vld [vmem:[#allocation6 + $0x28] sm:$0xff] }
   0xf   :  { %v56_v11 = vld [vmem:[#allocation6 + $0x20] sm:$0xff]  ;;  %v55_v12 = vld [vmem:[#allocation6 + $0x18] sm:$0xff]  ;;  %v54_v13 = vld [vmem:[#allocation6 + $0x10] sm:$0xff] }
  0x10   :  { %69 = vmatpush.xpose.msra.mxu0 %v66_v1  ;;  %v53_v14 = vld [vmem:[#allocation6 + $0x8] sm:$0xff]  ;;  %v52_v15 = vld [vmem:[#allocation6] sm:$0xff]  ;;  %v51_v16 = vld [vmem:[#allocation3] sm:$0xff] }
  0x11   :  { %v123_v17 = vld [vmem:[%s241_s2] ss:$0 sm:$0xff] }
  0x14   :  { %70 = vmatpush.xpose.msra.mxu0 %v65_v2 }
  0x18   :  { %71 = vmatpush.xpose.msra.mxu0 %v64_v3 }
  0x1c   :  { %72 = vmatpush.xpose.msra.mxu0 %v63_v4 }
  0x20   :  { %73 = vmatpush.xpose.msra.mxu0 %v62_v5 }
  0x24   :  { %74 = vmatpush.xpose.msra.mxu0 %v61_v6 }
  0x28   :  { %75 = vmatpush.xpose.msra.mxu0 %v60_v7 }
  0x2c   :  { %76 = vmatpush.xpose.msra.mxu0 %v59_v8 }
  0x30   :  { %77 = vmatpush.xpose.msra.mxu0 %v58_v9 }
  0x34   :  { %78 = vmatpush.xpose.msra.mxu0 %v57_v10 }
  0x38   :  { %79 = vmatpush.xpose.msra.mxu0 %v56_v11 }
  0x3c   :  { %80 = vmatpush.xpose.msra.mxu0 %v55_v12 }
  0x40   :  { %81 = vmatpush.xpose.msra.mxu0 %v54_v13 }
  0x44   :  { %82 = vmatpush.xpose.msra.mxu0 %v53_v14 }
  0x48   :  { %83 = vmatpush.xpose.msra.mxu0 %v52_v15 }
  0x4b   :  { %84 = vmatmul.f32.vlgmr.msra.gmra.mxu0 %v51_v16 }
  0xc8   :  { %v85_v18 = vpop.f32.mrf.mxu0 }
  0xc9   :  { %v98_v19 = vadd.f32 %v123_v17, %v85_v18 }
  0xcb   :  { %99 = vst [vmem:[#allocation8] sm:$0xff] %v98_v19 }
  0xcc   :  { %110 = dma.vmem_to_hbm [thread:$0]  %s106_s25, 128, %s108_s28, [#allocation5]  }
  0xcd   :  { %200 = dma.done.wait [#allocation5], 128  }
  0xce   :  { %201 = vsyncadd [#allocation5], 4294967168 }
  0xcf   :  { %115 = vsyncpa [#allocation4], 1 }
  0xd0   :  { %116 = vsyncpa [#allocation7], 1 }
  0xd1   :  { %117 = vsyncpa [#allocation5], 1 }

</bundles_post_ra>
